<compile_context>
chip_gen: v6e
topology: v6e:2x2x1
jax: 0.10.0
libtpu: 0.0.40
codegen_flags: <defaults>
</compile_context>

<pallas_src>
import jax
import jax.numpy as jnp
from jax.experimental import pallas as pl
from jax.experimental.pallas import tpu as pltpu

NUM_DETS = 8              # detections per image from the stand-in head
HID = 128                 # hidden width (MXU / lane aligned)
OUT = NUM_DETS * 5        # 4 box coords + 1 score per detection (=40)
OUT_P = 128               # lane-padded output width (cols >= OUT are padding)

VMEM_BUDGET = 26 * 1024 * 1024   # residency / tiling budget (headroom vs limit)
VMEM_LIMIT = 32 * 1024 * 1024    # scoped VMEM limit (safe on v5e/v6e/v7x)
TK_MAX = 4096                    # large contraction tile (review item 2)


def _round_up(x, m):
    return ((x + m - 1) // m) * m


# ---------------------------------------------------------------------------
# Fused kernel:  bf16(x_tile) @ w1_eff -> relu -> @ w2 -> sigmoid(score cols)
# grid = (batch tiles [parallel], K tiles [arbitrary, f32 accumulator])
# ---------------------------------------------------------------------------
def _make_fused_head_kernel(f0, tk, num_k, resident_w1):
    def kernel(x_ref, w1_ref, w2_ref, out_ref, acc_ref):
        k = pl.program_id(1)

        @pl.when(k == 0)
        def _():
            acc_ref[...] = jnp.zeros_like(acc_ref)

        # x arrives in its original dtype (f32); cast to bf16 here, in VMEM,
        # instead of materializing a bf16 copy in HBM (review item 1).
        xv = x_ref[...]
        if f0 % tk != 0:
            # Mask the K tail: guards both the zero-padded w1 rows and the
            # unspecified padding of the partial edge block (NaN-safe).
            col = jax.lax.broadcasted_iota(jnp.int32, xv.shape, 1) + k * tk
            xv = jnp.where(col < f0, xv, 0.0)
        xv = xv.astype(jnp.bfloat16)

        # Resident path: the whole (num_k, tk, HID) weight lives in VMEM
        # (constant block index -> DMA'd once); pick this step's K chunk with
        # a first-axis dynamic index.  Streamed path: block is (1, tk, HID).
        w1 = w1_ref[k] if resident_w1 else w1_ref[0]

        acc_ref[...] += jnp.dot(xv, w1, preferred_element_type=jnp.float32)

        @pl.when(k == num_k - 1)
        def _():
            # Stand-in head biases are zero and folded away (review item 8).
            feat = jnp.maximum(acc_ref[...], 0.0)
            raw = jnp.dot(feat.astype(jnp.bfloat16), w2_ref[...],
                          preferred_element_type=jnp.float32)
            # cols [0, 4*ND): raw box coords; [4*ND, 5*ND): sigmoid scores;
            # remaining cols are lane padding.  Keep the full-128-lane store
            # unmasked (review item 9: don't regress to sub-128 stores).
            col_o = jax.lax.broadcasted_iota(jnp.int32, raw.shape, 1)
            is_score = jnp.logical_and(col_o >= 4 * NUM_DETS,
                                       col_o < 5 * NUM_DETS)
            out_ref[...] = jnp.where(is_score, jax.nn.sigmoid(raw), raw)

    return kernel


def fused_det_head(x, w1, w2, *, tb, tk, resident_w1):
    b, f0 = x.shape
    num_k = w1.shape[0]
    grid = (pl.cdiv(b, tb), num_k)

    # x is streamed per (batch, K) tile; deepen buffering when the K loop is
    # long enough to benefit (review item 5).
    if num_k >= 3:
        x_spec = pl.BlockSpec((tb, tk), lambda i, k: (i, k),
                              pipeline_mode=pl.Buffered(3))
    else:
        x_spec = pl.BlockSpec((tb, tk), lambda i, k: (i, k))

    if resident_w1:
        # Constant block index -> the whole weight is DMA'd once and reused
        # across every batch tile (review item 4, option a).
        w1_spec = pl.BlockSpec((num_k, tk, HID), lambda i, k: (0, 0, 0))
    elif num_k >= 3:
        w1_spec = pl.BlockSpec((1, tk, HID), lambda i, k: (k, 0, 0),
                               pipeline_mode=pl.Buffered(3))
    else:
        w1_spec = pl.BlockSpec((1, tk, HID), lambda i, k: (k, 0, 0))

    return pl.pallas_call(
        _make_fused_head_kernel(f0, tk, num_k, resident_w1),
        out_shape=jax.ShapeDtypeStruct((b, OUT_P), jnp.float32),
        grid_spec=pltpu.PrefetchScalarGridSpec(
            num_scalar_prefetch=0,
            grid=grid,
            in_specs=[
                x_spec,                                            # x tiles
                w1_spec,                                           # w1_eff
                pl.BlockSpec((HID, OUT_P), lambda i, k: (0, 0)),   # w2
            ],
            out_specs=pl.BlockSpec((tb, OUT_P), lambda i, k: (i, 0)),
            scratch_shapes=[pltpu.VMEM((tb, HID), jnp.float32)],
        ),
        compiler_params=pltpu.CompilerParams(
            dimension_semantics=("parallel", "arbitrary"),
            vmem_limit_bytes=VMEM_LIMIT),
    )(x, w1, w2)


def _convert_targets_to_dicts(targets):
    # Host-side metadata restructuring mirroring the PyTorch helper.
    return [{"boxes": t,
             "labels": jnp.ones((t.shape[0],), dtype=jnp.int32)}
            for t in targets]


class ModelAdapterPallas:
    """JAX/Pallas equivalent of ModelAdapter (eval path) with a stand-in head."""

    def __init__(self, in_channels, height, width):
        f0 = in_channels * height * width
        self.F0 = f0
        # Large contraction tile (multiple of 128, never larger than F0's
        # 128-aligned span) so DMA per grid step amortizes step overhead.
        if f0 < 128:
            tk = f0
        else:
            tk = min(TK_MAX, 128 * (f0 // 128))
        self.TK = tk
        self.NUM_K = -(-f0 // tk)
        f0_pad = self.NUM_K * tk

        key = jax.random.PRNGKey(0)
        k1, k2 = jax.random.split(key)
        # Stand-in head parameters defined over the repeated (3x channel)
        # flattened input, then the channel repeat is folded into the weights.
        w1_full = (jax.random.normal(k1, (3 * f0, HID), jnp.float32)
                   * (1.0 / jnp.sqrt(3.0 * f0)))
        w1_eff = w1_full[0:f0] + w1_full[f0:2 * f0] + w1_full[2 * f0:3 * f0]
        w1_p = jnp.zeros((f0_pad, HID), jnp.float32).at[:f0].set(w1_eff)
        # Stored as (num_k, TK, HID) so the kernel can pick a K chunk with a
        # cheap first-axis dynamic index when the weight is VMEM-resident.
        self.w1 = w1_p.reshape(self.NUM_K, tk, HID).astype(jnp.bfloat16)

        w2_raw = (jax.random.normal(k2, (HID, OUT), jnp.float32)
                  * (1.0 / jnp.sqrt(HID)))
        self.w2 = (jnp.zeros((HID, OUT_P), jnp.float32)
                   .at[:, :OUT].set(w2_raw).astype(jnp.bfloat16))
        # Biases of the stand-in head are zero and omitted from the kernel; a
        # real model's b1/b2 would be added in the epilogue (review item 8).

    @staticmethod
    def _pick_tb(b):
        if b <= 8:
            return b                      # equal-to-full-dim block (tiny batch)
        # >=2 batch tiles once b > 8 so v7x's second TensorCore gets work;
        # waste capped below 8 dead rows; cap at 128 rows for VMEM.
        return max(8, min(128, _round_up(-(-b // 2), 8)))

    def forward_device(self, imgs):
        b = imgs.shape[0]
        x = imgs.reshape(b, -1)           # stays f32; bf16 cast happens in-kernel
        tb = self._pick_tb(b)

        # Decide w1 residency against the VMEM budget (double-buffer accounting).
        w1_bytes = 2 * self.NUM_K * self.TK * HID * 2      # bf16
        x_bytes = 3 * tb * self.TK * 4                     # f32, up to 3 buffers
        misc = 2 * HID * OUT_P * 2 + 2 * tb * OUT_P * 4 + tb * HID * 4 + (256 << 10)
        resident = (self.NUM_K > 1) and (w1_bytes + x_bytes + misc <= VMEM_BUDGET)

        out = fused_det_head(x, self.w1, self.w2,
                             tb=tb, tk=self.TK, resident_w1=resident)
        boxes = out[:, :4 * NUM_DETS].reshape(b, NUM_DETS, 4)
        scores = out[:, 4 * NUM_DETS:5 * NUM_DETS]
        return boxes, scores

    @staticmethod
    def split_per_image(boxes, scores):
        # single device->host transfer, split into per-image lists on host
        bb, ss = jax.device_get((boxes, scores))
        return list(bb), list(ss)

    def __call__(self, imgs, targets=None, training=False):
        if targets is not None:
            targets = _convert_targets_to_dicts(targets)
        boxes, scores = self.forward_device(imgs)
        if training and targets is not None:
            # TODO(synk): training-mode loss dict depends on the wrapped model;
            # no generic Pallas equivalent, so eval-style outputs are returned.
            return boxes, scores
        return self.split_per_image(boxes, scores)


def _reference_forward(adapter, imgs):
    """Pure-jnp reference (f32 math on the same bf16 weights)."""
    b = imgs.shape[0]
    x = imgs.reshape(b, -1).astype(jnp.bfloat16).astype(jnp.float32)
    w1 = adapter.w1.reshape(-1, HID)[:adapter.F0].astype(jnp.float32)
    w2 = adapter.w2.astype(jnp.float32)
    h1 = jnp.maximum(x @ w1, 0.0)
    y = h1.astype(jnp.bfloat16).astype(jnp.float32) @ w2
    boxes = y[:, :4 * NUM_DETS].reshape(b, NUM_DETS, 4)
    scores = jax.nn.sigmoid(y[:, 4 * NUM_DETS:5 * NUM_DETS])
    return boxes, scores


if __name__ == "__main__":
    # --- small config (single K tile, single batch tile) -------------------
    B, C, H, W = 2, 1, 16, 16
    imgs = jax.random.normal(jax.random.PRNGKey(0), (B, C, H, W), jnp.float32)

    adapter = ModelAdapterPallas(C, H, W)
    boxes_dev, scores_dev = adapter.forward_device(imgs)   # one fused kernel
    jax.block_until_ready((boxes_dev, scores_dev))

    ref_b, ref_s = _reference_forward(adapter, imgs)
    assert jnp.allclose(boxes_dev, ref_b, rtol=2e-2, atol=2e-2)
    assert jnp.allclose(scores_dev, ref_s, rtol=2e-2, atol=2e-2)

    boxes_list, scores_list = adapter.split_per_image(boxes_dev, scores_dev)
    assert len(boxes_list) == B and len(scores_list) == B
    assert boxes_list[0].shape == (NUM_DETS, 4)
    assert scores_list[0].shape == (NUM_DETS,)
    assert bool(jnp.all(scores_list[0] >= 0.0)) and bool(jnp.all(scores_list[0] <= 1.0))

    # --- second config: exercises multi-K-tile resident-w1 path, partial ---
    # batch/K edge blocks, the K-tail mask and Buffered(3) pipelining.
    B2, C2, H2, W2 = 18, 1, 96, 96
    imgs2 = jax.random.normal(jax.random.PRNGKey(1), (B2, C2, H2, W2), jnp.float32)
    adapter2 = ModelAdapterPallas(C2, H2, W2)
    b2, s2 = adapter2.forward_device(imgs2)
    jax.block_until_ready((b2, s2))
    rb2, rs2 = _reference_forward(adapter2, imgs2)
    assert jnp.allclose(b2, rb2, rtol=2e-2, atol=2e-2)
    assert jnp.allclose(s2, rs2, rtol=2e-2, atol=2e-2)

    print("KERNEL_OK")
</pallas_src>

<mosaic_0001>
module attributes {stable_mosaic.version = 11 : i64} {
  func.func @kernel(%arg0: i32, %arg1: i32, %arg2: memref<2x256xf32, #tpu.memory_space<vmem>>, %arg3: memref<1x256x128xbf16, #tpu.memory_space<vmem>>, %arg4: memref<128x128xbf16, #tpu.memory_space<vmem>>, %arg5: memref<2x128xf32, #tpu.memory_space<vmem>>, %arg6: memref<2x128xf32, #tpu.memory_space<vmem>>) attributes {dimension_semantics = [#tpu.dimension_semantics<parallel>, #tpu.dimension_semantics<arbitrary>], iteration_bounds = array<i64: 1, 1>, scalar_prefetch = 0 : i64, scratch_operands = 1 : i64, tpu.core_type = #tpu.core_type<tc>, window_params = [{transform_indices = @transform_0, window_bounds = array<i64: 2, 256>}, {transform_indices = @transform_1, window_bounds = array<i64: 1, 256, 128>}, {pipeline_mode = #tpu.pipeline_mode<synchronous>, transform_indices = @transform_2, window_bounds = array<i64: 128, 128>}, {transform_indices = @transform_3, window_bounds = array<i64: 2, 128>}]} {
    %c0_i32 = arith.constant 0 : i32
    %0 = arith.cmpi eq, %arg1, %c0_i32 : i32
    %1 = arith.extui %0 : i1 to i32
    %c0_i32_0 = arith.constant 0 : i32
    %2 = arith.cmpi ne, %1, %c0_i32_0 : i32
    scf.if %2 {
      %cst_11 = arith.constant 0.000000e+00 : f32
      %14 = vector.broadcast %cst_11 : f32 to vector<2x128xf32>
      %c0_12 = arith.constant 0 : index
      %c0_13 = arith.constant 0 : index
      %15 = vector.load %arg6[%c0_12, %c0_13] : memref<2x128xf32, #tpu.memory_space<vmem>>, vector<2x128xf32>
      tpu.vector_store %arg6[%c0_12, %c0_13], %14 {strides = array<i32>} : memref<2x128xf32, #tpu.memory_space<vmem>>, vector<2x128xf32>,
    } else {
    }
    %c0 = arith.constant 0 : index
    %c0_1 = arith.constant 0 : index
    %3 = vector.load %arg2[%c0, %c0_1] : memref<2x256xf32, #tpu.memory_space<vmem>>, vector<2x256xf32>
    %4 = arith.truncf %3 : vector<2x256xf32> to vector<2x256xbf16>
    %c0_2 = arith.constant 0 : index
    %c0_3 = arith.constant 0 : index
    %c0_4 = arith.constant 0 : index
    %5 = vector.load %arg3[%c0_2, %c0_3, %c0_4] : memref<1x256x128xbf16, #tpu.memory_space<vmem>>, vector<1x256x128xbf16>
    %6 = vector.shape_cast %5 : vector<1x256x128xbf16> to vector<256x128xbf16>
    %c0_5 = arith.constant 0 : index
    %c0_6 = arith.constant 0 : index
    %7 = vector.load %arg6[%c0_5, %c0_6] : memref<2x128xf32, #tpu.memory_space<vmem>>, vector<2x128xf32>
    %cst = arith.constant dense<0.000000e+00> : vector<2x128xf32>
    %8 = tpu.matmul %4, %6, %cst {dimension_numbers = #tpu.dot_dimension_numbers<[1], [0], [0], [1], [0, 0, 1, 1], [], []>} : vector<2x256xbf16>, vector<256x128xbf16>, vector<2x128xf32> -> vector<2x128xf32>
    %9 = arith.addf %7, %8 : vector<2x128xf32>
    %c0_7 = arith.constant 0 : index
    %c0_8 = arith.constant 0 : index
    %10 = vector.load %arg6[%c0_7, %c0_8] : memref<2x128xf32, #tpu.memory_space<vmem>>, vector<2x128xf32>
    tpu.vector_store %arg6[%c0_7, %c0_8], %9 {strides = array<i32>} : memref<2x128xf32, #tpu.memory_space<vmem>>, vector<2x128xf32>,
    %c0_i32_9 = arith.constant 0 : i32
    %11 = arith.cmpi eq, %arg1, %c0_i32_9 : i32
    %12 = arith.extui %11 : i1 to i32
    %c0_i32_10 = arith.constant 0 : i32
    %13 = arith.cmpi ne, %12, %c0_i32_10 : i32
    scf.if %13 {
      %c0_11 = arith.constant 0 : index
      %c0_12 = arith.constant 0 : index
      %14 = vector.load %arg6[%c0_11, %c0_12] : memref<2x128xf32, #tpu.memory_space<vmem>>, vector<2x128xf32>
      %cst_13 = arith.constant 0.000000e+00 : f32
      %15 = vector.broadcast %cst_13 : f32 to vector<2x128xf32>
      %16 = arith.maximumf %14, %15 : vector<2x128xf32>
      %17 = arith.truncf %16 : vector<2x128xf32> to vector<2x128xbf16>
      %c0_14 = arith.constant 0 : index
      %c0_15 = arith.constant 0 : index
      %18 = vector.load %arg4[%c0_14, %c0_15] : memref<128x128xbf16, #tpu.memory_space<vmem>>, vector<128x128xbf16>
      %cst_16 = arith.constant dense<0.000000e+00> : vector<2x128xf32>
      %19 = tpu.matmul %17, %18, %cst_16 {dimension_numbers = #tpu.dot_dimension_numbers<[1], [0], [0], [1], [0, 0, 1, 1], [], []>} : vector<2x128xbf16>, vector<128x128xbf16>, vector<2x128xf32> -> vector<2x128xf32>
      %20 = tpu.iota {dimensions = array<i32: 1>} : vector<2x128xi32>
      %c32_i32 = arith.constant 32 : i32
      %21 = vector.broadcast %c32_i32 : i32 to vector<2x128xi32>
      %22 = arith.cmpi sge, %20, %21 : vector<2x128xi32>
      %c40_i32 = arith.constant 40 : i32
      %23 = vector.broadcast %c40_i32 : i32 to vector<2x128xi32>
      %24 = arith.cmpi slt, %20, %23 : vector<2x128xi32>
      %25 = arith.andi %22, %24 : vector<2x128xi1>
      %26 = arith.negf %19 : vector<2x128xf32>
      %27 = math.exp %26 : vector<2x128xf32>
      %cst_17 = arith.constant 1.000000e+00 : f32
      %28 = vector.broadcast %cst_17 : f32 to vector<2x128xf32>
      %29 = arith.addf %28, %27 : vector<2x128xf32>
      %30 = arith.divf %28, %29 : vector<2x128xf32>
      %31 = arith.select %25, %30, %19 : vector<2x128xi1>, vector<2x128xf32>
      %c0_18 = arith.constant 0 : index
      %c0_19 = arith.constant 0 : index
      %32 = vector.load %arg5[%c0_18, %c0_19] : memref<2x128xf32, #tpu.memory_space<vmem>>, vector<2x128xf32>
      tpu.vector_store %arg5[%c0_18, %c0_19], %31 {strides = array<i32>} : memref<2x128xf32, #tpu.memory_space<vmem>>, vector<2x128xf32>,
    } else {
    }
    return
  }
  func.func @transform_0(%arg0: i32, %arg1: i32) -> (i32, i32) {
    %c0_i32 = arith.constant 0 : i32
    return %arg0, %arg1 : i32, i32
  }
  func.func @transform_1(%arg0: i32, %arg1: i32) -> (i32, i32, i32) {
    %c0_i32 = arith.constant 0 : i32
    %c0_i32_0 = arith.constant 0 : i32
    %c0_i32_1 = arith.constant 0 : i32
    return %arg1, %c0_i32, %c0_i32_0 : i32, i32, i32
  }
  func.func @transform_2(%arg0: i32, %arg1: i32) -> (i32, i32) {
    %c0_i32 = arith.constant 0 : i32
    %c0_i32_0 = arith.constant 0 : i32
    %c0_i32_1 = arith.constant 0 : i32
    return %c0_i32, %c0_i32_0 : i32, i32
  }
  func.func @transform_3(%arg0: i32, %arg1: i32) -> (i32, i32) {
    %c0_i32 = arith.constant 0 : i32
    %c0_i32_0 = arith.constant 0 : i32
    return %arg0, %c0_i32 : i32, i32
  }
}

</mosaic_0001>

<bundles_post_ra>
// kernel: tpu_custom_call.1
= control target key start
LH: loop header
LB: loop body
LE: loop exit
PB: predicated region body
PF: predicated region fallthrough
CT: control target
= control target key end

     0   :  { %8 = vsyncpa [#allocation4], 0  ;;  %s633_s0 = inlined_call_operand.hbm [shape: f32[2,256], index: 0, kind: input, shape index: {}]   ;;  %s634_s1 = inlined_call_operand.hbm [shape: bf16[1,256,128], index: 1, kind: input, shape index: {}]   ;;  %s635_s2 = inlined_call_operand.hbm [shape: bf16[128,128], index: 2, kind: input, shape index: {}]   ;;  %s636_s3 = inlined_call_operand.hbm [shape: f32[2,128], index: 3, kind: output, shape index: {}]  }
   0x1   :  { %9 = vsyncpa [#allocation7], 0 }
   0x2   :  { %10 = vsyncpa [#allocation5], 0  ;;  %s583_s12 = smov [#allocation6]  }
   0x3   :  { %s26_s13 = sshll.u32 %s583_s12, 4  ;;  %s27_s13 = int_to_ptr.vmem [resolvable:$true] %s26_s13 }
   0x4   :  { %s505_s14 = scalar_lea.vmem %s27_s13, 2048  ;;  %p510_p1 = scmp.lt.s32.totalorder %s27_s13, %s27_s13 }
   0x5   :  { %p506_p0 = scmp.ne.s32.totalorder %s27_s13, %s505_s14  ;;  %p511_p2 = scmp.lt.s32.totalorder %s505_s14, %s505_s14 }
   0x7   :  { %p512_p3 = por %p511_p2, %p510_p1 }
   0x9   :  { %p513_p4 = pnand %p512_p3, %p506_p0 }
   0xb   :  { %516 = shalt.err (!%p513_p4)
}
   0xc   :  { %s584_s15 = smov 64   ;;  %s585_s16 = smov 4  }
   0xd   :  { %32 = dma.hbm_to_vmem [thread:$0]  %s634_s1, 2048, %s27_s13, [#allocation7], %s584_s15, %s584_s15, %s585_s16  }
   0xe   :  { %s586_s19 = smov [#allocation3]   ;;  %s587_s21 = smov [#allocation8]  }
   0xf   :  { %s17_s20 = sshll.u32 %s586_s19, 4  ;;  %s38_s22 = sshll.u32 %s587_s21, 4  ;;  %s18_s20 = int_to_ptr.vmem [resolvable:$true] %s17_s20  ;;  %s39_s22 = int_to_ptr.vmem [resolvable:$true] %s38_s22 }
  0x10   :  { %s525_s23 = scalar_lea.vmem %s18_s20, 64  ;;  %p530_p6 = scmp.lt.s32.totalorder %s18_s20, %s18_s20 }
  0x11   :  { %p526_p5 = scmp.ne.s32.totalorder %s18_s20, %s525_s23  ;;  %p531_p7 = scmp.lt.s32.totalorder %s525_s23, %s525_s23 }
  0x13   :  { %p532_p8 = por %p531_p7, %p530_p6 }
  0x15   :  { %p533_p9 = pnand %p532_p8, %p526_p5 }
  0x17   :  { %536 = shalt.err (!%p533_p9)
}
  0x18   :  { %20 = dma.hbm_to_vmem [thread:$0]  %s633_s0, 64, %s18_s20, [#allocation4]  }
  0x19   :  { %s545_s26 = scalar_lea.vmem %s39_s22, 1024  ;;  %p550_p11 = scmp.lt.s32.totalorder %s39_s22, %s39_s22 }
  0x1a   :  { %p546_p10 = scmp.ne.s32.totalorder %s39_s22, %s545_s26  ;;  %p551_p12 = scmp.lt.s32.totalorder %s545_s26, %s545_s26 }
  0x1c   :  { %p552_p13 = por %p551_p12, %p550_p11 }
  0x1e   :  { %p553_p0 = pnand %p552_p13, %p546_p10 }
  0x20   :  { %556 = shalt.err (!%p553_p0)
}
  0x21   :  { %44 = dma.hbm_to_vmem [thread:$0]  %s635_s2, 1024, %s39_s22, [#allocation7], %s584_s15, %s584_s15, %s585_s16  }
  0x22   :  { %577 = dma.done.wait [#allocation4], 64  }
  0x23   :  { %578 = vsyncadd [#allocation4], 4294967232 }
  0x24   :  { %579 = dma.done.wait [#allocation7], 3072  }
  0x25   :  { %580 = vsyncadd [#allocation7], 4294964224  ;;  %v588_v0 = vmov 0.0   ;;  %v469_v1 = vld [vmem:[#allocation6 + $0x78] sm:$0xff]   ;;  %v471_v3 = vld [vmem:[#allocation6 + $0x70] sm:$0xff]   ;;  %vm589_vm0 = vmmov 0   ;;  %v355_v46 = vlaneseq }
  0x26   :  { %441 = vmatprep.subr.bf16.mxu1 %v588_v0  ;;  %59 = vst [vmem:[#allocation2] sm:$0x3] %v588_v0  ;;  %v470_v2 = vld [vmem:[#allocation6 + $0x38] sm:$0xff]   ;;  %410 = vmatprep.subr.bf16.mxu0 %v469_v1  ;;  %v472_v4 = vld [vmem:[#allocation6 + $0x30] sm:$0xff]   ;;  %v473_v5 = vld [vmem:[#allocation6 + $0x68] sm:$0xff]   ;;  %s590_s0 = smov [#allocation9]  }
  0x27   :  { %411 = vmatpush3.bf16.msra.mxu0 %v470_v2  ;;  %v474_v6 = vld [vmem:[#allocation6 + $0x28] sm:$0xff]   ;;  %v475_v7 = vld [vmem:[#allocation6 + $0x60] sm:$0xff]   ;;  %v477_v9 = vld [vmem:[#allocation6 + $0x58] sm:$0xff]   ;;  %457 = vmatprep.mubr.msk.bf16.mxu1 %vm589_vm0, %v588_v0  ;;  %v356_v47 = vand.u32 127, %v355_v46  ;;  %s374_s2 = sshll.u32 %s590_s0, 4  ;;  %s375_s2 = int_to_ptr.vmem [resolvable:$true] %s374_s2 }
  0x28   :  { %412 = vmatprep.subr.bf16.mxu0 %v471_v3  ;;  %v476_v8 = vld [vmem:[#allocation6 + $0x20] sm:$0xff]   ;;  %v478_v10 = vld [vmem:[#allocation6 + $0x18] sm:$0xff]   ;;  %v479_v11 = vld [vmem:[#allocation6 + $0x50] sm:$0xff]   ;;  %s557_s28 = scalar_lea.vmem %s375_s2, 32  ;;  %p562_p2 = scmp.lt.s32.totalorder %s375_s2, %s375_s2 }
  0x29   :  { %v384_v12 = vld.sshfl [vmem:[#allocation3] sm:$0x33 pattern:$0x76325410]  ;;  %v480_v13 = vld [vmem:[#allocation6 + $0x10] sm:$0xff]   ;;  %v481_v16 = vld [vmem:[#allocation6 + $0x48] sm:$0xff]   ;;  %p558_p1 = scmp.ne.s32.totalorder %s375_s2, %s557_s28  ;;  %p563_p3 = scmp.lt.s32.totalorder %s557_s28, %s557_s28 }
  0x2a   :  { %v69_v14 = vcombine.high %v384_v12, %v384_v12  ;;  %v485_v15 = vld [vmem:[#allocation8 + $0x38] sm:$0xff]   ;;  %v486_v18 = vld [vmem:[#allocation8 + $0x30] sm:$0xff]   ;;  %v482_v19 = vld [vmem:[#allocation6 + $0x8] sm:$0xff]   ;;  %v72_v23 = vpack.c.bf16 %v384_v12, %v384_v12  ;;  %vm357_vm1 = vcmp.ge.s32.totalorder %v356_v47, 32  ;;  %vm358_vm2 = vcmp.lt.s32.totalorder %v356_v47, 40 }
  0x2b   :  { %413 = vmatpush3.bf16.msra.mxu0 %v472_v4  ;;  %442 = vmatpush3.bf16.msra.mxu1 %v485_v15  ;;  %v487_v20 = vld [vmem:[#allocation8 + $0x28] sm:$0xff]   ;;  %v483_v21 = vld [vmem:[#allocation6 + $0x40] sm:$0xff]   ;;  %v489_v25 = vld [vmem:[#allocation8 + $0x18] sm:$0xff]   ;;  %p564_p4 = por %p563_p3, %p562_p2 }
  0x2c   :  { %414 = vmatprep.subr.bf16.mxu0 %v473_v5  ;;  %v73_v17 = vpack.c.bf16 %v69_v14, %v69_v14  ;;  %443 = vmatprep.subr.bf16.mxu1 %v588_v0  ;;  %v484_v22 = vld [vmem:[#allocation6] sm:$0xff]   ;;  %v490_v26 = vld [vmem:[#allocation8 + $0x10] sm:$0xff]   ;;  %v491_v27 = vld [vmem:[#allocation8 + $0x8] sm:$0xff]  }
  0x2d   :  { %v488_v24 = vld [vmem:[#allocation8 + $0x20] sm:$0xff]   ;;  %v106_v30 = vld [vmem:[#allocation2] sm:$0x3]  ;;  %vm359_vm3 = vmand %vm357_vm1, %vm358_vm2  ;;  %p565_p5 = pnand %p564_p4, %p558_p1 }
  0x2e   :  { %235 = vmatprep.mubr.bf16.mxu0 %v73_v17  ;;  %v492_v28 = vld [vmem:[#allocation8] sm:$0xff]  }
  0x2f   :  { %415 = vmatpush3.bf16.msra.mxu0 %v474_v6  ;;  %444 = vmatpush3.bf16.msra.mxu1 %v486_v18 }
  0x30   :  { %416 = vmatprep.subr.bf16.mxu0 %v475_v7  ;;  %445 = vmatprep.subr.bf16.mxu1 %v588_v0 }
  0x33   :  { %417 = vmatpush3.bf16.msra.mxu0 %v476_v8  ;;  %446 = vmatpush3.bf16.msra.mxu1 %v487_v20 }
  0x34   :  { %418 = vmatprep.subr.bf16.mxu0 %v477_v9  ;;  %447 = vmatprep.subr.bf16.mxu1 %v588_v0 }
  0x37   :  { %419 = vmatpush3.bf16.msra.mxu0 %v478_v10  ;;  %448 = vmatpush3.bf16.msra.mxu1 %v488_v24 }
  0x38   :  { %420 = vmatprep.subr.bf16.mxu0 %v479_v11  ;;  %449 = vmatprep.subr.bf16.mxu1 %v588_v0 }
  0x3b   :  { %421 = vmatpush3.bf16.msra.mxu0 %v480_v13  ;;  %450 = vmatpush3.bf16.msra.mxu1 %v489_v25 }
  0x3c   :  { %422 = vmatprep.subr.bf16.mxu0 %v481_v16  ;;  %451 = vmatprep.subr.bf16.mxu1 %v588_v0 }
  0x3f   :  { %423 = vmatpush3.bf16.msra.mxu0 %v482_v19  ;;  %452 = vmatpush3.bf16.msra.mxu1 %v490_v26 }
  0x40   :  { %424 = vmatprep.subr.bf16.mxu0 %v483_v21  ;;  %453 = vmatprep.subr.bf16.mxu1 %v588_v0 }
  0x43   :  { %425 = vmatpush3.bf16.msra.mxu0 %v484_v22  ;;  %454 = vmatpush3.bf16.msra.mxu1 %v491_v27 }
  0x44   :  { %455 = vmatprep.subr.bf16.mxu1 %v588_v0 }
  0x46   :  { %236 = vmatmul.mubr.bf16.vlgmr.msra.gmra.mxu0 %v72_v23 }
  0x47   :  { %456 = vmatpush3.bf16.msra.mxu1 %v492_v28 }
 0x106   :  { %v426_v29 = vpop.f32.mrf.mxu0 }
 0x108   :  { %v427_v31 = vpop.f32.mrf.mxu0 }
 0x109   :  { %v428_v32 = vadd.f32 %v427_v31, %v426_v29 }
 0x10a   :  { %v429_v33 = vpop.f32.mrf.mxu0 }
 0x10b   :  { %v243_v34 = vadd.f32 %v428_v32, %v106_v30 }
 0x10c   :  { %v430_v35 = vpop.f32.mrf.mxu0 }
 0x10d   :  { %244 = vst [vmem:[#allocation2] sm:$0x3] %v243_v34 }
 0x114   :  { %v248_v36 = vld [vmem:[#allocation2] sm:$0x3] }
 0x115   :  { %v249_v37 = vmax.f32 %v248_v36, 0.0 }
 0x117   :  { %v250_v38 = vpack.c.bf16 %v249_v37, %v249_v37 }
 0x119   :  { %458 = vmatmul.mubr.bf16.vlgmr.msra.gmra.mxu1 %v250_v38 }
 0x1d9   :  { %v349_v39 = vpop.f32.mrf.mxu1 }
 0x1da   :  { %v409_v40 = vmul.f32 -1.442695, %v349_v39 }
 0x1db   :  { %v459_v41 = vpop.f32.mrf.mxu1 }
 0x1dc   :  { %493 = vpow2.f32 %v409_v40 }
 0x1dd   :  { %v352_v42 = vpop.f32.mrf.mxu1 }
 0x1df   :  { %v460_v43 = vpop.f32.mrf.mxu1 }
 0x1e9   :  { %v494_v44 = vpop.eup %493 }
 0x1ea   :  { %v363_v45 = vadd.f32 1.0, %v494_v44 }
 0x1ec   :  { %495 = vrcp.f32 %v363_v45 }
 0x1f9   :  { %v496_v48 = vpop.eup %495 }
 0x1fa   :  { %v366_v49 = vsel %vm359_vm3, %v496_v48, %v349_v39 }
 0x1fb   :  { %367 = vst [vmem:[#allocation9] sm:$0x3] %v366_v49 }
 0x1fc   :  { %568 = shalt.err (!%p565_p5)
}
 0x1fd   :  { %377 = dma.vmem_to_hbm [thread:$0]  %s375_s2, 32, %s636_s3, [#allocation5]  }
 0x1fe   :  { %581 = dma.done.wait [#allocation5], 32  }
 0x1ff   :  { %582 = vsyncadd [#allocation5], 4294967264 }
 0x200   :  { %381 = vsyncpa [#allocation4], 1 }
 0x201   :  { %382 = vsyncpa [#allocation7], 1 }
 0x202   :  { %383 = vsyncpa [#allocation5], 1 }

</bundles_post_ra>
